<compile_context>
chip_gen: v7x
topology: tpu7x:2x2x1
jax: 0.10.0
libtpu: 0.0.40
codegen_flags: <defaults>
</compile_context>

<pallas_src>
import jax
import jax.numpy as jnp
from jax.experimental import pallas as pl
from jax.experimental.pallas import tpu as pltpu


# -----------------------------------------------------------------------------
# Default path: forward() is a pure pass-through -> plain identity (free).
# -----------------------------------------------------------------------------
def yolo_layer_forward(x, img_size, anchors=None, num_classes=None):
    """JAX equivalent of YOLOLayer.forward.

    x:        (B, num_anchors*(num_classes+5), H, W) NCHW feature map
    img_size: Python int — network input size
    Returns (y, stride) with y == x (unchanged) and stride = img_size // H
    as a Python int, mirroring the `self.stride` the PyTorch module stores.

    anchors / num_classes (and the anchors/anchor_grid buffers, MSE/BCE
    losses) are __init__-time module state that forward() never reads; they
    are only consulted for a shape sanity check.
    """
    B, C, H, W = x.shape
    if anchors is not None and num_classes is not None:
        assert C == len(anchors) * (num_classes + 5), (
            "channel dim must be num_anchors*(num_classes+5)")
    stride = int(img_size) // int(H)
    # TODO(synk): the module also mutates self.stride; in JAX the caller keeps
    # the returned Python int instead of module state.
    return x, stride


# -----------------------------------------------------------------------------
# Pallas path: materialize a fresh output buffer with ONE HBM->HBM async DMA.
# -----------------------------------------------------------------------------
def _dma_copy_kernel(x_hbm_ref, y_hbm_ref, sem):
    # Whole-array HBM->HBM DMA: no VMEM staging, no grid, no vector work.
    cp = pltpu.make_async_copy(x_hbm_ref, y_hbm_ref, sem)
    cp.start()
    cp.wait()


def yolo_layer_forward_copy(x, img_size, anchors=None, num_classes=None):
    """Same semantics as yolo_layer_forward, but returns a freshly
    materialized output buffer via a single HBM->HBM DMA.  Works for any
    shape/dtype (no lane-alignment or VMEM-capacity constraints)."""
    B, C, H, W = x.shape
    if anchors is not None and num_classes is not None:
        assert C == len(anchors) * (num_classes + 5), (
            "channel dim must be num_anchors*(num_classes+5)")
    stride = int(img_size) // int(H)

    nbytes = x.size * jnp.dtype(x.dtype).itemsize
    y = pl.pallas_call(
        _dma_copy_kernel,
        out_shape=jax.ShapeDtypeStruct(x.shape, x.dtype),
        in_specs=[pl.BlockSpec(memory_space=pl.ANY)],    # raw HBM ref
        out_specs=pl.BlockSpec(memory_space=pl.ANY),     # raw HBM ref
        scratch_shapes=[pltpu.SemaphoreType.DMA(())],
        cost_estimate=pl.CostEstimate(
            flops=0, transcendentals=0, bytes_accessed=2 * nbytes),
    )(x)
    return y, stride


if __name__ == "__main__":
    # Deterministic parameters / inputs (small shapes).
    anchors = [(10, 13), (16, 30), (33, 23)]   # 3 anchors
    num_classes = 2                            # no = 7 -> C = 3 * 7 = 21
    B, H, W = 2, 16, 16
    C = len(anchors) * (num_classes + 5)
    img_size = 64                              # -> stride = 64 // 16 = 4

    key = jax.random.PRNGKey(0)
    x = jax.random.normal(key, (B, C, H, W), dtype=jnp.float32)

    # Default path: plain identity (free under XLA).
    y, stride = yolo_layer_forward(x, img_size, anchors, num_classes)
    y = jax.block_until_ready(y)
    assert y.shape == x.shape and y.dtype == x.dtype
    assert bool(jnp.all(y == x)), "forward must return x unchanged"
    assert isinstance(stride, int) and stride == img_size // H

    # Pallas path: fresh output buffer via a single HBM->HBM DMA.
    y2, stride2 = yolo_layer_forward_copy(x, img_size, anchors, num_classes)
    y2 = jax.block_until_ready(y2)
    assert y2.shape == x.shape and y2.dtype == x.dtype
    assert bool(jnp.all(y2 == x)), "DMA copy path must return x unchanged"
    assert stride2 == img_size // H

    # Realistic "awkward" YOLO shape (element count NOT a multiple of 128):
    # previously rejected by the lane-dense copy path; the DMA path handles it.
    x_odd = jax.random.normal(jax.random.PRNGKey(0), (1, C, 13, 13),
                              dtype=jnp.float32)
    y3, stride3 = yolo_layer_forward_copy(x_odd, 416, anchors, num_classes)
    y3 = jax.block_until_ready(y3)
    assert bool(jnp.all(y3 == x_odd)), "odd-shape DMA copy must be exact"
    assert stride3 == 416 // 13

    print("KERNEL_OK")
</pallas_src>

<mosaic_0001>
module attributes {stable_mosaic.version = 11 : i64} {
  func.func @_dma_copy_kernel(%arg0: memref<2x21x16x16xf32, #tpu.memory_space<any>>, %arg1: memref<2x21x16x16xf32, #tpu.memory_space<any>>, %arg2: memref<!tpu.dma_semaphore, #tpu.memory_space<semaphore_mem>>) attributes {dimension_semantics = [], scalar_prefetch = 0 : i64, scratch_operands = 1 : i64, tpu.core_type = #tpu.core_type<tc>} {
    tpu.enqueue_dma source(%arg0 : memref<2x21x16x16xf32, #tpu.memory_space<any>>) target(%arg1 : memref<2x21x16x16xf32, #tpu.memory_space<any>>) target_semaphore(%arg2 : memref<!tpu.dma_semaphore, #tpu.memory_space<semaphore_mem>>)
    tpu.wait_dma2 semaphore(%arg2 : memref<!tpu.dma_semaphore, #tpu.memory_space<semaphore_mem>>) src(%arg0 : memref<2x21x16x16xf32, #tpu.memory_space<any>>) dst(%arg1 : memref<2x21x16x16xf32, #tpu.memory_space<any>>)
    return
  }
}

</mosaic_0001>

<bundles_post_ra>
// kernel: tpu_custom_call.1
= control target key start
LH: loop header
LB: loop body
LE: loop exit
PB: predicated region body
PF: predicated region fallthrough
CT: control target
= control target key end

     0   :  { %s750_s0 = inlined_call_operand.vmem [shape: f32[2,21,16,16], index: 0, kind: input, shape index: {}]   ;;  %s751_s1 = inlined_call_operand.vmem [shape: f32[2,21,16,16], index: 1, kind: output, shape index: {}]  }
   0x1   :  { %v38_v0 = vld [vmem:[%s750_s0] sm:$0xff]  ;;  %v40_v1 = vld [vmem:[%s750_s0 + $0x8] sm:$0xff]  ;;  %v42_v2 = vld [vmem:[%s750_s0 + $0x10] sm:$0xff] }
   0x2   :  { %39 = vst [vmem:[%s751_s1] sm:$0xff] %v38_v0  ;;  %41 = vst [vmem:[%s751_s1 + $0x8] sm:$0xff] %v40_v1  ;;  %v44_v3 = vld [vmem:[%s750_s0 + $0x18] sm:$0xff]  ;;  %v46_v4 = vld [vmem:[%s750_s0 + $0x20] sm:$0xff] }
   0x3   :  { %43 = vst [vmem:[%s751_s1 + $0x10] sm:$0xff] %v42_v2  ;;  %v48_v5 = vld [vmem:[%s750_s0 + $0x28] sm:$0xff]  ;;  %45 = vst [vmem:[%s751_s1 + $0x18] sm:$0xff] %v44_v3  ;;  %v50_v6 = vld [vmem:[%s750_s0 + $0x30] sm:$0xff] }
   0x4   :  { %47 = vst [vmem:[%s751_s1 + $0x20] sm:$0xff] %v46_v4  ;;  %49 = vst [vmem:[%s751_s1 + $0x28] sm:$0xff] %v48_v5  ;;  %v52_v7 = vld [vmem:[%s750_s0 + $0x38] sm:$0xff]  ;;  %v54_v8 = vld [vmem:[%s750_s0 + $0x40] sm:$0xff] }
   0x5   :  { %51 = vst [vmem:[%s751_s1 + $0x30] sm:$0xff] %v50_v6  ;;  %53 = vst [vmem:[%s751_s1 + $0x38] sm:$0xff] %v52_v7  ;;  %v56_v9 = vld [vmem:[%s750_s0 + $0x48] sm:$0xff]  ;;  %v58_v10 = vld [vmem:[%s750_s0 + $0x50] sm:$0xff] }
   0x6   :  { %55 = vst [vmem:[%s751_s1 + $0x40] sm:$0xff] %v54_v8  ;;  %v60_v11 = vld [vmem:[%s750_s0 + $0x58] sm:$0xff]  ;;  %57 = vst [vmem:[%s751_s1 + $0x48] sm:$0xff] %v56_v9  ;;  %v62_v12 = vld [vmem:[%s750_s0 + $0x60] sm:$0xff] }
   0x7   :  { %59 = vst [vmem:[%s751_s1 + $0x50] sm:$0xff] %v58_v10  ;;  %61 = vst [vmem:[%s751_s1 + $0x58] sm:$0xff] %v60_v11  ;;  %v64_v13 = vld [vmem:[%s750_s0 + $0x68] sm:$0xff]  ;;  %v66_v14 = vld [vmem:[%s750_s0 + $0x70] sm:$0xff] }
   0x8   :  { %63 = vst [vmem:[%s751_s1 + $0x60] sm:$0xff] %v62_v12  ;;  %65 = vst [vmem:[%s751_s1 + $0x68] sm:$0xff] %v64_v13  ;;  %v68_v15 = vld [vmem:[%s750_s0 + $0x78] sm:$0xff]  ;;  %v70_v16 = vld [vmem:[%s750_s0 + $0x80] sm:$0xff] }
   0x9   :  { %67 = vst [vmem:[%s751_s1 + $0x70] sm:$0xff] %v66_v14  ;;  %v72_v17 = vld [vmem:[%s750_s0 + $0x88] sm:$0xff]  ;;  %69 = vst [vmem:[%s751_s1 + $0x78] sm:$0xff] %v68_v15  ;;  %v74_v18 = vld [vmem:[%s750_s0 + $0x90] sm:$0xff] }
   0xa   :  { %71 = vst [vmem:[%s751_s1 + $0x80] sm:$0xff] %v70_v16  ;;  %73 = vst [vmem:[%s751_s1 + $0x88] sm:$0xff] %v72_v17  ;;  %v76_v19 = vld [vmem:[%s750_s0 + $0x98] sm:$0xff]  ;;  %v78_v20 = vld [vmem:[%s750_s0 + $0xa0] sm:$0xff] }
   0xb   :  { %75 = vst [vmem:[%s751_s1 + $0x90] sm:$0xff] %v74_v18  ;;  %77 = vst [vmem:[%s751_s1 + $0x98] sm:$0xff] %v76_v19  ;;  %v80_v21 = vld [vmem:[%s750_s0 + $0xa8] sm:$0xff]  ;;  %v82_v22 = vld [vmem:[%s750_s0 + $0xb0] sm:$0xff] }
   0xc   :  { %79 = vst [vmem:[%s751_s1 + $0xa0] sm:$0xff] %v78_v20  ;;  %v84_v23 = vld [vmem:[%s750_s0 + $0xb8] sm:$0xff]  ;;  %81 = vst [vmem:[%s751_s1 + $0xa8] sm:$0xff] %v80_v21  ;;  %v86_v24 = vld [vmem:[%s750_s0 + $0xc0] sm:$0xff] }
   0xd   :  { %83 = vst [vmem:[%s751_s1 + $0xb0] sm:$0xff] %v82_v22  ;;  %85 = vst [vmem:[%s751_s1 + $0xb8] sm:$0xff] %v84_v23  ;;  %v88_v25 = vld [vmem:[%s750_s0 + $0xc8] sm:$0xff]  ;;  %v90_v26 = vld [vmem:[%s750_s0 + $0xd0] sm:$0xff] }
   0xe   :  { %87 = vst [vmem:[%s751_s1 + $0xc0] sm:$0xff] %v86_v24  ;;  %89 = vst [vmem:[%s751_s1 + $0xc8] sm:$0xff] %v88_v25  ;;  %v92_v27 = vld [vmem:[%s750_s0 + $0xd8] sm:$0xff]  ;;  %v94_v28 = vld [vmem:[%s750_s0 + $0xe0] sm:$0xff] }
   0xf   :  { %91 = vst [vmem:[%s751_s1 + $0xd0] sm:$0xff] %v90_v26  ;;  %v96_v29 = vld [vmem:[%s750_s0 + $0xe8] sm:$0xff]  ;;  %93 = vst [vmem:[%s751_s1 + $0xd8] sm:$0xff] %v92_v27  ;;  %v98_v30 = vld [vmem:[%s750_s0 + $0xf0] sm:$0xff] }
  0x10   :  { %95 = vst [vmem:[%s751_s1 + $0xe0] sm:$0xff] %v94_v28  ;;  %97 = vst [vmem:[%s751_s1 + $0xe8] sm:$0xff] %v96_v29  ;;  %v100_v31 = vld [vmem:[%s750_s0 + $0xf8] sm:$0xff]  ;;  %v102_v32 = vld [vmem:[%s750_s0 + $0x100] sm:$0xff] }
  0x11   :  { %99 = vst [vmem:[%s751_s1 + $0xf0] sm:$0xff] %v98_v30  ;;  %101 = vst [vmem:[%s751_s1 + $0xf8] sm:$0xff] %v100_v31  ;;  %v104_v33 = vld [vmem:[%s750_s0 + $0x108] sm:$0xff]  ;;  %v106_v34 = vld [vmem:[%s750_s0 + $0x110] sm:$0xff] }
  0x12   :  { %103 = vst [vmem:[%s751_s1 + $0x100] sm:$0xff] %v102_v32  ;;  %v108_v35 = vld [vmem:[%s750_s0 + $0x118] sm:$0xff]  ;;  %105 = vst [vmem:[%s751_s1 + $0x108] sm:$0xff] %v104_v33  ;;  %v110_v36 = vld [vmem:[%s750_s0 + $0x120] sm:$0xff] }
  0x13   :  { %107 = vst [vmem:[%s751_s1 + $0x110] sm:$0xff] %v106_v34  ;;  %109 = vst [vmem:[%s751_s1 + $0x118] sm:$0xff] %v108_v35  ;;  %v112_v37 = vld [vmem:[%s750_s0 + $0x128] sm:$0xff]  ;;  %v114_v38 = vld [vmem:[%s750_s0 + $0x130] sm:$0xff] }
  0x14   :  { %111 = vst [vmem:[%s751_s1 + $0x120] sm:$0xff] %v110_v36  ;;  %113 = vst [vmem:[%s751_s1 + $0x128] sm:$0xff] %v112_v37  ;;  %v116_v39 = vld [vmem:[%s750_s0 + $0x138] sm:$0xff]  ;;  %v118_v40 = vld [vmem:[%s750_s0 + $0x140] sm:$0xff] }
  0x15   :  { %115 = vst [vmem:[%s751_s1 + $0x130] sm:$0xff] %v114_v38  ;;  %v120_v41 = vld [vmem:[%s750_s0 + $0x148] sm:$0xff]  ;;  %117 = vst [vmem:[%s751_s1 + $0x138] sm:$0xff] %v116_v39  ;;  %v122_v42 = vld [vmem:[%s750_s0 + $0x150] sm:$0xff] }
  0x16   :  { %119 = vst [vmem:[%s751_s1 + $0x140] sm:$0xff] %v118_v40  ;;  %121 = vst [vmem:[%s751_s1 + $0x148] sm:$0xff] %v120_v41  ;;  %v124_v43 = vld [vmem:[%s750_s0 + $0x158] sm:$0xff]  ;;  %v126_v44 = vld [vmem:[%s750_s0 + $0x160] sm:$0xff] }
  0x17   :  { %123 = vst [vmem:[%s751_s1 + $0x150] sm:$0xff] %v122_v42  ;;  %125 = vst [vmem:[%s751_s1 + $0x158] sm:$0xff] %v124_v43  ;;  %v128_v45 = vld [vmem:[%s750_s0 + $0x168] sm:$0xff]  ;;  %v130_v46 = vld [vmem:[%s750_s0 + $0x170] sm:$0xff] }
  0x18   :  { %127 = vst [vmem:[%s751_s1 + $0x160] sm:$0xff] %v126_v44  ;;  %v132_v47 = vld [vmem:[%s750_s0 + $0x178] sm:$0xff]  ;;  %129 = vst [vmem:[%s751_s1 + $0x168] sm:$0xff] %v128_v45  ;;  %v134_v48 = vld [vmem:[%s750_s0 + $0x180] sm:$0xff] }
  0x19   :  { %131 = vst [vmem:[%s751_s1 + $0x170] sm:$0xff] %v130_v46  ;;  %133 = vst [vmem:[%s751_s1 + $0x178] sm:$0xff] %v132_v47  ;;  %v136_v49 = vld [vmem:[%s750_s0 + $0x188] sm:$0xff]  ;;  %v138_v50 = vld [vmem:[%s750_s0 + $0x190] sm:$0xff] }
  0x1a   :  { %135 = vst [vmem:[%s751_s1 + $0x180] sm:$0xff] %v134_v48  ;;  %137 = vst [vmem:[%s751_s1 + $0x188] sm:$0xff] %v136_v49  ;;  %v140_v51 = vld [vmem:[%s750_s0 + $0x198] sm:$0xff]  ;;  %v142_v52 = vld [vmem:[%s750_s0 + $0x1a0] sm:$0xff] }
  0x1b   :  { %139 = vst [vmem:[%s751_s1 + $0x190] sm:$0xff] %v138_v50  ;;  %v144_v53 = vld [vmem:[%s750_s0 + $0x1a8] sm:$0xff]  ;;  %141 = vst [vmem:[%s751_s1 + $0x198] sm:$0xff] %v140_v51  ;;  %v146_v54 = vld [vmem:[%s750_s0 + $0x1b0] sm:$0xff] }
  0x1c   :  { %143 = vst [vmem:[%s751_s1 + $0x1a0] sm:$0xff] %v142_v52  ;;  %145 = vst [vmem:[%s751_s1 + $0x1a8] sm:$0xff] %v144_v53  ;;  %v148_v55 = vld [vmem:[%s750_s0 + $0x1b8] sm:$0xff]  ;;  %v150_v56 = vld [vmem:[%s750_s0 + $0x1c0] sm:$0xff] }
  0x1d   :  { %147 = vst [vmem:[%s751_s1 + $0x1b0] sm:$0xff] %v146_v54  ;;  %149 = vst [vmem:[%s751_s1 + $0x1b8] sm:$0xff] %v148_v55  ;;  %v152_v57 = vld [vmem:[%s750_s0 + $0x1c8] sm:$0xff]  ;;  %v154_v58 = vld [vmem:[%s750_s0 + $0x1d0] sm:$0xff] }
  0x1e   :  { %151 = vst [vmem:[%s751_s1 + $0x1c0] sm:$0xff] %v150_v56  ;;  %v156_v59 = vld [vmem:[%s750_s0 + $0x1d8] sm:$0xff]  ;;  %153 = vst [vmem:[%s751_s1 + $0x1c8] sm:$0xff] %v152_v57  ;;  %v158_v60 = vld [vmem:[%s750_s0 + $0x1e0] sm:$0xff] }
  0x1f   :  { %155 = vst [vmem:[%s751_s1 + $0x1d0] sm:$0xff] %v154_v58  ;;  %157 = vst [vmem:[%s751_s1 + $0x1d8] sm:$0xff] %v156_v59  ;;  %v160_v61 = vld [vmem:[%s750_s0 + $0x1e8] sm:$0xff]  ;;  %v162_v62 = vld [vmem:[%s750_s0 + $0x1f0] sm:$0xff] }
  0x20   :  { %159 = vst [vmem:[%s751_s1 + $0x1e0] sm:$0xff] %v158_v60  ;;  %161 = vst [vmem:[%s751_s1 + $0x1e8] sm:$0xff] %v160_v61  ;;  %v164_v63 = vld [vmem:[%s750_s0 + $0x1f8] sm:$0xff]  ;;  %v166_v0 = vld [vmem:[%s750_s0 + $0x200] sm:$0xff] }
  0x21   :  { %163 = vst [vmem:[%s751_s1 + $0x1f0] sm:$0xff] %v162_v62  ;;  %v168_v1 = vld [vmem:[%s750_s0 + $0x208] sm:$0xff]  ;;  %165 = vst [vmem:[%s751_s1 + $0x1f8] sm:$0xff] %v164_v63  ;;  %v170_v2 = vld [vmem:[%s750_s0 + $0x210] sm:$0xff] }
  0x22   :  { %167 = vst [vmem:[%s751_s1 + $0x200] sm:$0xff] %v166_v0  ;;  %169 = vst [vmem:[%s751_s1 + $0x208] sm:$0xff] %v168_v1  ;;  %v172_v3 = vld [vmem:[%s750_s0 + $0x218] sm:$0xff]  ;;  %v174_v4 = vld [vmem:[%s750_s0 + $0x220] sm:$0xff] }
  0x23   :  { %171 = vst [vmem:[%s751_s1 + $0x210] sm:$0xff] %v170_v2  ;;  %173 = vst [vmem:[%s751_s1 + $0x218] sm:$0xff] %v172_v3  ;;  %v176_v5 = vld [vmem:[%s750_s0 + $0x228] sm:$0xff]  ;;  %v178_v6 = vld [vmem:[%s750_s0 + $0x230] sm:$0xff] }
  0x24   :  { %175 = vst [vmem:[%s751_s1 + $0x220] sm:$0xff] %v174_v4  ;;  %v180_v7 = vld [vmem:[%s750_s0 + $0x238] sm:$0xff]  ;;  %177 = vst [vmem:[%s751_s1 + $0x228] sm:$0xff] %v176_v5  ;;  %v182_v8 = vld [vmem:[%s750_s0 + $0x240] sm:$0xff] }
  0x25   :  { %179 = vst [vmem:[%s751_s1 + $0x230] sm:$0xff] %v178_v6  ;;  %181 = vst [vmem:[%s751_s1 + $0x238] sm:$0xff] %v180_v7  ;;  %v184_v9 = vld [vmem:[%s750_s0 + $0x248] sm:$0xff]  ;;  %v186_v10 = vld [vmem:[%s750_s0 + $0x250] sm:$0xff] }
  0x26   :  { %183 = vst [vmem:[%s751_s1 + $0x240] sm:$0xff] %v182_v8  ;;  %185 = vst [vmem:[%s751_s1 + $0x248] sm:$0xff] %v184_v9  ;;  %v188_v11 = vld [vmem:[%s750_s0 + $0x258] sm:$0xff]  ;;  %v190_v12 = vld [vmem:[%s750_s0 + $0x260] sm:$0xff] }
  0x27   :  { %187 = vst [vmem:[%s751_s1 + $0x250] sm:$0xff] %v186_v10  ;;  %v192_v13 = vld [vmem:[%s750_s0 + $0x268] sm:$0xff]  ;;  %189 = vst [vmem:[%s751_s1 + $0x258] sm:$0xff] %v188_v11  ;;  %v194_v14 = vld [vmem:[%s750_s0 + $0x270] sm:$0xff] }
  0x28   :  { %191 = vst [vmem:[%s751_s1 + $0x260] sm:$0xff] %v190_v12  ;;  %193 = vst [vmem:[%s751_s1 + $0x268] sm:$0xff] %v192_v13  ;;  %v196_v15 = vld [vmem:[%s750_s0 + $0x278] sm:$0xff]  ;;  %v198_v16 = vld [vmem:[%s750_s0 + $0x280] sm:$0xff] }
  0x29   :  { %195 = vst [vmem:[%s751_s1 + $0x270] sm:$0xff] %v194_v14  ;;  %197 = vst [vmem:[%s751_s1 + $0x278] sm:$0xff] %v196_v15  ;;  %v200_v17 = vld [vmem:[%s750_s0 + $0x288] sm:$0xff]  ;;  %v202_v18 = vld [vmem:[%s750_s0 + $0x290] sm:$0xff] }
  0x2a   :  { %199 = vst [vmem:[%s751_s1 + $0x280] sm:$0xff] %v198_v16  ;;  %v204_v19 = vld [vmem:[%s750_s0 + $0x298] sm:$0xff]  ;;  %201 = vst [vmem:[%s751_s1 + $0x288] sm:$0xff] %v200_v17 }
  0x2b   :  { %203 = vst [vmem:[%s751_s1 + $0x290] sm:$0xff] %v202_v18  ;;  %205 = vst [vmem:[%s751_s1 + $0x298] sm:$0xff] %v204_v19 }
  0x2c   :  { %213 = vsyncadd [#allocation2], 10752 }
  0x2d   :  { %234 = dma.done.wait [#allocation2], 10752 }
  0x2e   :  { %235 = vsyncadd [#allocation2], 4294956544 }
  0x2f   :  { %219 = vsyncmov [#allocation2] }
  0x32   :  { %s220_s23 = vpop.sfrf %219 }
  0x33   :  { %p233_p0 = scmp.ne.s32.totalorder %s220_s23, 0 }
  0x35   :  { %224 = shalt.err (%p233_p0)  }

</bundles_post_ra>
